<compile_context>
chip_gen: v5e
topology: v5e:2x2
jax: 0.10.0
libtpu: 0.0.40
codegen_flags: <defaults>
</compile_context>

<pallas_src>
import functools

import jax
import jax.numpy as jnp
from jax.experimental import pallas as pl
from jax.experimental.pallas import tpu as pltpu


def _round_up(x, m):
    return (x + m - 1) // m * m


def _vmem_budget_bytes():
    """~85% of this generation's physical VMEM (v5e/v6e ~109 MiB, v7x ~54 MiB)."""
    try:
        cap = int(pltpu.get_tpu_info().vmem_capacity_bytes)
    except Exception:
        cap = 64 << 20  # conservative fallback: v7x physical VMEM
    return int(0.85 * cap)


def _mm(w, x, C):
    """(Cout, C) @ (C, T) -> (Cout, T) in f32.

    For small C the MXU LHS would occupy only a few of 128/256 rows (~3%
    utilisation) plus result-FIFO pop latency, so use unrolled VPU broadcast
    multiply-adds instead; otherwise use the MXU."""
    if C < 8:
        acc = w[:, 0:1] * x[0:1, :]
        for i in range(1, C):
            acc = acc + w[:, i:i + 1] * x[i:i + 1, :]
        return acc
    return jnp.dot(w, x, preferred_element_type=jnp.float32)


# --------------------------------------------------------------------------
# Kernels
# --------------------------------------------------------------------------
def _gate_fused_kernel(x1_ref, x2_ref, wp_ref, out_ref, *, C, seg, NB):
    """Single fused pass; block = (NB, C, HW).  Every wpack segment starts on
    a 128-lane boundary so the static slices below never straddle a tile."""
    w1 = wp_ref[:, 0:C]                      # (C, C)  conv1 (Cout, Cin)
    w2 = wp_ref[:, seg:seg + C]              # (C, C)  conv2
    w3 = wp_ref[:, 2 * seg:2 * seg + C]      # (C, C)  W conv (BN folded)
    tail = 3 * seg
    b12 = wp_ref[:, tail:tail + 1]           # (C, 1)  b1 + b2
    b3 = wp_ref[:, tail + 1:tail + 2]        # (C, 1)  BN-folded bias
    wpsi = wp_ref[:, tail + 2:tail + 3]      # (C, 1)  psi weight (transposed)
    bpsi = wp_ref[0:1, tail + 3:tail + 4]    # (1, 1)  psi bias

    for b in range(NB):                      # static unroll, NB <= 8
        x1 = x1_ref[b].astype(jnp.float32)   # (C, HW)
        x2 = x2_ref[b].astype(jnp.float32)

        # f = relu(conv1(x1) + conv2(x2)) with biases fused into one add.
        f = jnp.maximum(_mm(w1, x1, C) + _mm(w2, x2, C) + b12, 0.0)

        # psi = 1-channel 1x1 conv: VPU multiply + sublane (XLU) reduce.
        psi = jnp.sum(f * wpsi, axis=0, keepdims=True) + bpsi          # (1, HW)

        # concatenation_range_normalise over the spatial (lane) axis.
        # NOTE: like the PyTorch module, no epsilon — spatially-constant psi
        # yields NaN/Inf in both implementations (semantics preserved).
        pmin = jnp.min(psi, axis=1, keepdims=True)
        pmax = jnp.max(psi, axis=1, keepdims=True)
        sigm = (psi - pmin) / (pmax - pmin)                            # (1, HW)

        y = sigm * x1                                                  # (C, HW)
        out = _mm(w3, y, C) + b3
        out_ref[b] = out.astype(out_ref.dtype)


def _psi_tile_kernel(x1_ref, x2_ref, wp_ref, psi_ref, *, C, seg):
    """Tiled pass 1: psi for one (1, C, T) spatial tile."""
    w1 = wp_ref[:, 0:C]
    w2 = wp_ref[:, seg:seg + C]
    tail = 3 * seg
    b12 = wp_ref[:, tail:tail + 1]
    wpsi = wp_ref[:, tail + 2:tail + 3]
    bpsi = wp_ref[0:1, tail + 3:tail + 4]

    x1 = x1_ref[0].astype(jnp.float32)       # (C, T)
    x2 = x2_ref[0].astype(jnp.float32)
    f = jnp.maximum(_mm(w1, x1, C) + _mm(w2, x2, C) + b12, 0.0)
    psi_ref[0] = jnp.sum(f * wpsi, axis=0, keepdims=True) + bpsi       # (1, T)


def _apply_tile_kernel(x1_ref, psi_ref, pmin_ref, pmax_ref, wp_ref, out_ref,
                       *, C, seg):
    """Tiled pass 2: range-normalise, gate x1, apply W (BN folded)."""
    w3 = wp_ref[:, 2 * seg:2 * seg + C]
    tail = 3 * seg
    b3 = wp_ref[:, tail + 1:tail + 2]

    x1 = x1_ref[0].astype(jnp.float32)       # (C, T)
    psi = psi_ref[0]                          # (1, T) f32
    pmin = pmin_ref[0]                        # (1, 1)
    pmax = pmax_ref[0]                        # (1, 1)
    sigm = (psi - pmin) / (pmax - pmin)       # (1, T)
    y = sigm * x1                             # (C, T)
    out_ref[0] = (_mm(w3, y, C) + b3).astype(out_ref.dtype)


# --------------------------------------------------------------------------
# Wrapper
# --------------------------------------------------------------------------
def _pack_params(params, C):
    """Fold eval-mode BatchNorm into the W conv and pack all small params into
    one operand with every segment aligned to a 128-lane boundary:
      [ w1 |pad| w2 |pad| w3' |pad| (b1+b2, b3', wpsi^T, bpsi) |pad ]."""
    eps = 1e-5
    bn_scale = params["bn_gamma"] / jnp.sqrt(params["bn_var"] + eps)   # (C,)
    bn_shift = params["bn_beta"] - params["bn_mean"] * bn_scale        # (C,)
    w3p = bn_scale[:, None] * params["w3"]                             # (C, C)
    b3p = bn_scale * params["b3"] + bn_shift                           # (C,)

    seg = _round_up(C, 128)
    PW = _round_up(3 * seg + 4, 128)

    def pad_cols(a, width):
        a = a.astype(jnp.float32)
        return jnp.pad(a, ((0, 0), (0, width - a.shape[1])))

    tail = jnp.concatenate(
        [(params["b1"] + params["b2"]).astype(jnp.float32)[:, None],
         b3p.astype(jnp.float32)[:, None],
         params["wpsi"].astype(jnp.float32).T,                         # (C, 1)
         jnp.full((C, 1), params["bpsi"][0], jnp.float32)],
        axis=1)                                                        # (C, 4)

    wpack = jnp.concatenate(
        [pad_cols(params["w1"], seg),
         pad_cols(params["w2"], seg),
         pad_cols(w3p, seg),
         pad_cols(tail, PW - 3 * seg)],
        axis=1)                                                        # (C, PW)
    return wpack, seg, PW


def anatomical_attention_gate2(x1, x2, params, *, force_tiled=False,
                               tile_hw=None):
    """x1, x2: (N, C, H, W).  Returns (N, C, H, W) in the input dtype
    (bf16 HBM I/O supported; all in-kernel math runs in f32)."""
    N, C, H, W = x1.shape
    HW = H * W
    itemsize = jnp.dtype(x1.dtype).itemsize
    cpad = _round_up(C, 8)

    # NCHW -> (N, C, HW): a free view for contiguous NCHW inputs.
    x1f = x1.reshape(N, C, HW)
    x2f = x2.reshape(N, C, HW)

    wpack, seg, PW = _pack_params(params, C)
    wpack_bytes = C * PW * 4

    budget = _vmem_budget_bytes()

    # --- VMEM models (double-buffered I/O + f32 intermediates + margin) ---
    def single_pass_bytes(nb):
        io = nb * cpad * HW * itemsize
        f32 = nb * cpad * HW * 4
        return 6 * io + 6 * f32 + 2 * wpack_bytes + (2 << 20)

    def tiled_bytes(t):
        io = cpad * t * itemsize
        f32 = cpad * t * 4
        return 4 * io + 4 * f32 + 4 * t * 4 + 2 * wpack_bytes + (2 << 20)

    use_tiled = force_tiled or single_pass_bytes(1) > budget
    if use_tiled and HW % 128 != 0:
        # TODO(synk): ragged spatial tiling (HW not a multiple of 128) needs
        #             masked edge tiles; fall back to the single-slab path.
        use_tiled = False

    if not use_tiled:
        # ---------- single fused pass, NB batches per grid step ----------
        nb = 1
        for cand in range(min(N, 8), 0, -1):
            if N % cand == 0 and single_pass_bytes(cand) <= budget:
                nb = cand
                break
        blk_in = pl.BlockSpec((nb, C, HW), lambda g: (g, 0, 0))
        blk_out = pl.BlockSpec((nb, C, HW), lambda g: (g, 0, 0))
        wp_spec = pl.BlockSpec((C, PW), lambda g: (0, 0))
        cost = pl.CostEstimate(
            flops=2 * 3 * N * C * C * HW + 10 * N * C * HW,
            transcendentals=0,
            bytes_accessed=3 * N * C * HW * itemsize + wpack_bytes)
        out = pl.pallas_call(
            functools.partial(_gate_fused_kernel, C=C, seg=seg, NB=nb),
            out_shape=jax.ShapeDtypeStruct((N, C, HW), x1.dtype),
            grid_spec=pltpu.PrefetchScalarGridSpec(
                num_scalar_prefetch=0,
                grid=(N // nb,),
                in_specs=[blk_in, blk_in, wp_spec],
                out_specs=blk_out),
            compiler_params=pltpu.CompilerParams(
                dimension_semantics=("parallel",),
                vmem_limit_bytes=budget),
            cost_estimate=cost,
        )(x1f, x2f, wpack)
        return out.reshape(N, C, H, W)

    # ---------- two-pass HW-tiled path (large C*HW / v7x 64 MiB VMEM) ------
    if tile_hw is not None:
        T = int(tile_hw)
        assert HW % T == 0 and T % 128 == 0
    else:
        T = 128
        t = (min(HW, 16384) // 128) * 128
        while t >= 128:
            if HW % t == 0 and tiled_bytes(t) <= budget:
                T = t
                break
            t -= 128
    n_tiles = HW // T

    x_blk = pl.BlockSpec((1, C, T), lambda n, t: (n, 0, t))
    out_blk = pl.BlockSpec((1, C, T), lambda n, t: (n, 0, t))
    psi_in_blk = pl.BlockSpec((1, 1, T), lambda n, t: (n, 0, t))
    psi_out_blk = pl.BlockSpec((1, 1, T), lambda n, t: (n, 0, t))
    sc_blk = pl.BlockSpec((1, 1, 1), lambda n, t: (n, 0, 0))
    wp_spec2 = pl.BlockSpec((C, PW), lambda n, t: (0, 0))
    cparams = pltpu.CompilerParams(
        dimension_semantics=("parallel", "parallel"),
        vmem_limit_bytes=budget)

    # Pass 1: psi per spatial tile.
    psi = pl.pallas_call(
        functools.partial(_psi_tile_kernel, C=C, seg=seg),
        out_shape=jax.ShapeDtypeStruct((N, 1, HW), jnp.float32),
        grid_spec=pltpu.PrefetchScalarGridSpec(
            num_scalar_prefetch=0,
            grid=(N, n_tiles),
            in_specs=[x_blk, x_blk, wp_spec2],
            out_specs=psi_out_blk),
        compiler_params=cparams,
        cost_estimate=pl.CostEstimate(
            flops=2 * 2 * N * C * C * HW + 6 * N * C * HW,
            transcendentals=0,
            bytes_accessed=2 * N * C * HW * itemsize + N * HW * 4),
    )(x1f, x2f, wpack)

    # Global per-batch range on the small (N, 1, HW) psi map.
    pmin = jnp.min(psi, axis=-1, keepdims=True)   # (N, 1, 1)
    pmax = jnp.max(psi, axis=-1, keepdims=True)   # (N, 1, 1)

    # Pass 2: normalise, gate, W conv (BN folded), store.
    out = pl.pallas_call(
        functools.partial(_apply_tile_kernel, C=C, seg=seg),
        out_shape=jax.ShapeDtypeStruct((N, C, HW), x1.dtype),
        grid_spec=pltpu.PrefetchScalarGridSpec(
            num_scalar_prefetch=0,
            grid=(N, n_tiles),
            in_specs=[x_blk, psi_in_blk, sc_blk, sc_blk, wp_spec2],
            out_specs=out_blk),
        compiler_params=cparams,
        cost_estimate=pl.CostEstimate(
            flops=2 * N * C * C * HW + 4 * N * C * HW,
            transcendentals=0,
            bytes_accessed=2 * N * C * HW * itemsize + N * HW * 4),
    )(x1f, psi, pmin, pmax, wpack)
    return out.reshape(N, C, H, W)


# --------------------------------------------------------------------------
# Pure-JAX reference (matches the PyTorch forward, eval-mode BN)
# --------------------------------------------------------------------------
def reference(x1, x2, params):
    eps = 1e-5

    def conv1x1(x, w, b):  # w: (Cout, Cin)
        return jnp.einsum('oi,nihw->nohw', w, x) + b[None, :, None, None]

    theta = conv1x1(x1, params["w1"], params["b1"])
    phi = conv1x1(x2, params["w2"], params["b2"])
    f = jnp.maximum(theta + phi, 0.0)
    psi = jnp.einsum('oi,nihw->nohw', params["wpsi"], f) \
        + params["bpsi"][None, :, None, None]
    pmin = jnp.min(psi, axis=(2, 3), keepdims=True)
    pmax = jnp.max(psi, axis=(2, 3), keepdims=True)
    sigm = (psi - pmin) / (pmax - pmin)
    y = sigm * x1
    wy = conv1x1(y, params["w3"], params["b3"])
    scale = params["bn_gamma"] / jnp.sqrt(params["bn_var"] + eps)
    shift = params["bn_beta"] - params["bn_mean"] * scale
    return wy * scale[None, :, None, None] + shift[None, :, None, None]


def make_params(key, C):
    keys = jax.random.split(key, 12)
    return {
        # conv weights stored PyTorch-style as (Cout, Cin)
        "w1": 0.2 * jax.random.normal(keys[0], (C, C), jnp.float32),
        "b1": 0.1 * jax.random.normal(keys[1], (C,), jnp.float32),
        "w2": 0.2 * jax.random.normal(keys[2], (C, C), jnp.float32),
        "b2": 0.1 * jax.random.normal(keys[3], (C,), jnp.float32),
        "wpsi": 0.2 * jax.random.normal(keys[4], (1, C), jnp.float32),
        "bpsi": 0.1 * jax.random.normal(keys[5], (1,), jnp.float32),
        "w3": 0.2 * jax.random.normal(keys[6], (C, C), jnp.float32),
        "b3": 0.1 * jax.random.normal(keys[7], (C,), jnp.float32),
        "bn_gamma": 0.5 + jax.random.uniform(keys[8], (C,), jnp.float32),
        "bn_beta": 0.1 * jax.random.normal(keys[9], (C,), jnp.float32),
        "bn_mean": 0.1 * jax.random.normal(keys[10], (C,), jnp.float32),
        "bn_var": 0.5 + jax.random.uniform(keys[11], (C,), jnp.float32),
    }


if __name__ == "__main__":
    key = jax.random.PRNGKey(0)
    k1, k2, k3, k4, k5, k6 = jax.random.split(key, 6)

    # Test A: small problem -> single fused pass, batches packed into one
    #         grid step, VPU (C < 8) matmul path.
    N, C, H, W = 2, 4, 16, 16
    x1 = jax.random.normal(k1, (N, C, H, W), jnp.float32)
    x2 = jax.random.normal(k2, (N, C, H, W), jnp.float32)
    params = make_params(k3, C)
    out = jax.block_until_ready(anatomical_attention_gate2(x1, x2, params))
    ref = jax.block_until_ready(reference(x1, x2, params))
    assert out.shape == (N, C, H, W)
    err_a = float(jnp.max(jnp.abs(out - ref)))
    assert err_a < 2e-4, f"single-pass mismatch vs reference: {err_a}"

    # Test B: force the two-pass HW-tiled path (the one large-C*HW / v7x
    #         problems take automatically), MXU (C >= 8) matmul path.
    N2, C2, H2, W2 = 2, 8, 32, 32
    xb1 = jax.random.normal(k4, (N2, C2, H2, W2), jnp.float32)
    xb2 = jax.random.normal(k5, (N2, C2, H2, W2), jnp.float32)
    params2 = make_params(k6, C2)
    out2 = jax.block_until_ready(
        anatomical_attention_gate2(xb1, xb2, params2,
                                   force_tiled=True, tile_hw=256))
    ref2 = jax.block_until_ready(reference(xb1, xb2, params2))
    assert out2.shape == (N2, C2, H2, W2)
    err_b = float(jnp.max(jnp.abs(out2 - ref2)))
    assert err_b < 2e-4, f"tiled-path mismatch vs reference: {err_b}"

    print("KERNEL_OK")
</pallas_src>

<mosaic_0001>
module attributes {stable_mosaic.version = 11 : i64} {
  func.func @_gate_fused_kernel(%arg0: i32, %arg1: memref<2x4x256xf32, #tpu.memory_space<vmem>>, %arg2: memref<2x4x256xf32, #tpu.memory_space<vmem>>, %arg3: memref<4x512xf32, #tpu.memory_space<vmem>>, %arg4: memref<2x4x256xf32, #tpu.memory_space<vmem>>) attributes {dimension_semantics = [#tpu.dimension_semantics<parallel>], iteration_bounds = array<i64: 1>, scalar_prefetch = 0 : i64, scratch_operands = 0 : i64, tpu.core_type = #tpu.core_type<tc>, window_params = [{transform_indices = @transform_0, window_bounds = array<i64: 2, 4, 256>}, {transform_indices = @transform_1, window_bounds = array<i64: 2, 4, 256>}, {pipeline_mode = #tpu.pipeline_mode<synchronous>, transform_indices = @transform_2, window_bounds = array<i64: 4, 512>}, {transform_indices = @transform_3, window_bounds = array<i64: 2, 4, 256>}]} {
    %c0 = arith.constant 0 : index
    %c0_0 = arith.constant 0 : index
    %0 = vector.load %arg3[%c0, %c0_0] : memref<4x512xf32, #tpu.memory_space<vmem>>, vector<4x4xf32>
    %c0_1 = arith.constant 0 : index
    %c128 = arith.constant 128 : index
    %1 = vector.load %arg3[%c0_1, %c128] : memref<4x512xf32, #tpu.memory_space<vmem>>, vector<4x4xf32>
    %c0_2 = arith.constant 0 : index
    %c256 = arith.constant 256 : index
    %2 = vector.load %arg3[%c0_2, %c256] : memref<4x512xf32, #tpu.memory_space<vmem>>, vector<4x4xf32>
    %c0_3 = arith.constant 0 : index
    %c384 = arith.constant 384 : index
    %3 = vector.load %arg3[%c0_3, %c384] : memref<4x512xf32, #tpu.memory_space<vmem>>, vector<4x1xf32>
    %c0_4 = arith.constant 0 : index
    %c385 = arith.constant 385 : index
    %4 = vector.load %arg3[%c0_4, %c385] : memref<4x512xf32, #tpu.memory_space<vmem>>, vector<4x1xf32>
    %c0_5 = arith.constant 0 : index
    %c386 = arith.constant 386 : index
    %5 = vector.load %arg3[%c0_5, %c386] : memref<4x512xf32, #tpu.memory_space<vmem>>, vector<4x1xf32>
    %c0_6 = arith.constant 0 : index
    %c387 = arith.constant 387 : index
    %6 = vector.load %arg3[%c0_6, %c387] : memref<4x512xf32, #tpu.memory_space<vmem>>, vector<1x1xf32>
    %c0_7 = arith.constant 0 : index
    %c0_8 = arith.constant 0 : index
    %c0_9 = arith.constant 0 : index
    %7 = vector.load %arg1[%c0_7, %c0_8, %c0_9] : memref<2x4x256xf32, #tpu.memory_space<vmem>>, vector<1x4x256xf32>
    %8 = vector.shape_cast %7 : vector<1x4x256xf32> to vector<4x256xf32>
    %c0_10 = arith.constant 0 : index
    %c0_11 = arith.constant 0 : index
    %c0_12 = arith.constant 0 : index
    %9 = vector.load %arg2[%c0_10, %c0_11, %c0_12] : memref<2x4x256xf32, #tpu.memory_space<vmem>>, vector<1x4x256xf32>
    %10 = vector.shape_cast %9 : vector<1x4x256xf32> to vector<4x256xf32>
    %11 = vector.extract_strided_slice %0 {offsets = [0, 0], sizes = [4, 1], strides = [1, 1]} : vector<4x4xf32> to vector<4x1xf32>
    %12 = vector.extract_strided_slice %8 {offsets = [0, 0], sizes = [1, 256], strides = [1, 1]} : vector<4x256xf32> to vector<1x256xf32>
    %13 = vector.broadcast %11 : vector<4x1xf32> to vector<4x256xf32>
    %14 = vector.broadcast %12 : vector<1x256xf32> to vector<4x256xf32>
    %15 = arith.mulf %13, %14 : vector<4x256xf32>
    %16 = vector.extract_strided_slice %0 {offsets = [0, 1], sizes = [4, 1], strides = [1, 1]} : vector<4x4xf32> to vector<4x1xf32>
    %17 = vector.extract_strided_slice %8 {offsets = [1, 0], sizes = [1, 256], strides = [1, 1]} : vector<4x256xf32> to vector<1x256xf32>
    %18 = vector.broadcast %16 : vector<4x1xf32> to vector<4x256xf32>
    %19 = vector.broadcast %17 : vector<1x256xf32> to vector<4x256xf32>
    %20 = arith.mulf %18, %19 : vector<4x256xf32>
    %21 = arith.addf %15, %20 : vector<4x256xf32>
    %22 = vector.extract_strided_slice %0 {offsets = [0, 2], sizes = [4, 1], strides = [1, 1]} : vector<4x4xf32> to vector<4x1xf32>
    %23 = vector.extract_strided_slice %8 {offsets = [2, 0], sizes = [1, 256], strides = [1, 1]} : vector<4x256xf32> to vector<1x256xf32>
    %24 = vector.broadcast %22 : vector<4x1xf32> to vector<4x256xf32>
    %25 = vector.broadcast %23 : vector<1x256xf32> to vector<4x256xf32>
    %26 = arith.mulf %24, %25 : vector<4x256xf32>
    %27 = arith.addf %21, %26 : vector<4x256xf32>
    %28 = vector.extract_strided_slice %0 {offsets = [0, 3], sizes = [4, 1], strides = [1, 1]} : vector<4x4xf32> to vector<4x1xf32>
    %29 = vector.extract_strided_slice %8 {offsets = [3, 0], sizes = [1, 256], strides = [1, 1]} : vector<4x256xf32> to vector<1x256xf32>
    %30 = vector.broadcast %28 : vector<4x1xf32> to vector<4x256xf32>
    %31 = vector.broadcast %29 : vector<1x256xf32> to vector<4x256xf32>
    %32 = arith.mulf %30, %31 : vector<4x256xf32>
    %33 = arith.addf %27, %32 : vector<4x256xf32>
    %34 = vector.extract_strided_slice %1 {offsets = [0, 0], sizes = [4, 1], strides = [1, 1]} : vector<4x4xf32> to vector<4x1xf32>
    %35 = vector.extract_strided_slice %10 {offsets = [0, 0], sizes = [1, 256], strides = [1, 1]} : vector<4x256xf32> to vector<1x256xf32>
    %36 = vector.broadcast %34 : vector<4x1xf32> to vector<4x256xf32>
    %37 = vector.broadcast %35 : vector<1x256xf32> to vector<4x256xf32>
    %38 = arith.mulf %36, %37 : vector<4x256xf32>
    %39 = vector.extract_strided_slice %1 {offsets = [0, 1], sizes = [4, 1], strides = [1, 1]} : vector<4x4xf32> to vector<4x1xf32>
    %40 = vector.extract_strided_slice %10 {offsets = [1, 0], sizes = [1, 256], strides = [1, 1]} : vector<4x256xf32> to vector<1x256xf32>
    %41 = vector.broadcast %39 : vector<4x1xf32> to vector<4x256xf32>
    %42 = vector.broadcast %40 : vector<1x256xf32> to vector<4x256xf32>
    %43 = arith.mulf %41, %42 : vector<4x256xf32>
    %44 = arith.addf %38, %43 : vector<4x256xf32>
    %45 = vector.extract_strided_slice %1 {offsets = [0, 2], sizes = [4, 1], strides = [1, 1]} : vector<4x4xf32> to vector<4x1xf32>
    %46 = vector.extract_strided_slice %10 {offsets = [2, 0], sizes = [1, 256], strides = [1, 1]} : vector<4x256xf32> to vector<1x256xf32>
    %47 = vector.broadcast %45 : vector<4x1xf32> to vector<4x256xf32>
    %48 = vector.broadcast %46 : vector<1x256xf32> to vector<4x256xf32>
    %49 = arith.mulf %47, %48 : vector<4x256xf32>
    %50 = arith.addf %44, %49 : vector<4x256xf32>
    %51 = vector.extract_strided_slice %1 {offsets = [0, 3], sizes = [4, 1], strides = [1, 1]} : vector<4x4xf32> to vector<4x1xf32>
    %52 = vector.extract_strided_slice %10 {offsets = [3, 0], sizes = [1, 256], strides = [1, 1]} : vector<4x256xf32> to vector<1x256xf32>
    %53 = vector.broadcast %51 : vector<4x1xf32> to vector<4x256xf32>
    %54 = vector.broadcast %52 : vector<1x256xf32> to vector<4x256xf32>
    %55 = arith.mulf %53, %54 : vector<4x256xf32>
    %56 = arith.addf %50, %55 : vector<4x256xf32>
    %57 = arith.addf %33, %56 : vector<4x256xf32>
    %58 = vector.broadcast %3 : vector<4x1xf32> to vector<4x256xf32>
    %59 = arith.addf %57, %58 : vector<4x256xf32>
    %cst = arith.constant 0.000000e+00 : f32
    %60 = vector.broadcast %cst : f32 to vector<4x256xf32>
    %61 = arith.maximumf %59, %60 : vector<4x256xf32>
    %62 = vector.broadcast %5 : vector<4x1xf32> to vector<4x256xf32>
    %63 = arith.mulf %61, %62 : vector<4x256xf32>
    %cst_13 = arith.constant dense<0.000000e+00> : vector<256xf32>
    %64 = vector.multi_reduction <add>, %63, %cst_13 [0] : vector<4x256xf32> to vector<256xf32>
    %65 = vector.shape_cast %64 : vector<256xf32> to vector<1x256xf32>
    %66 = vector.broadcast %6 : vector<1x1xf32> to vector<1x256xf32>
    %67 = arith.addf %65, %66 : vector<1x256xf32>
    %cst_14 = arith.constant dense<0x7F800000> : vector<1xf32>
    %68 = vector.multi_reduction <minimumf>, %67, %cst_14 [1] : vector<1x256xf32> to vector<1xf32>
    %69 = vector.shape_cast %68 : vector<1xf32> to vector<1x1xf32>
    %cst_15 = arith.constant dense<0xFF800000> : vector<1xf32>
    %70 = vector.multi_reduction <maximumf>, %67, %cst_15 [1] : vector<1x256xf32> to vector<1xf32>
    %71 = vector.shape_cast %70 : vector<1xf32> to vector<1x1xf32>
    %72 = vector.broadcast %69 : vector<1x1xf32> to vector<1x256xf32>
    %73 = arith.subf %67, %72 : vector<1x256xf32>
    %74 = arith.subf %71, %69 : vector<1x1xf32>
    %75 = vector.broadcast %74 : vector<1x1xf32> to vector<1x256xf32>
    %76 = arith.divf %73, %75 : vector<1x256xf32>
    %77 = vector.broadcast %76 : vector<1x256xf32> to vector<4x256xf32>
    %78 = arith.mulf %77, %8 : vector<4x256xf32>
    %79 = vector.extract_strided_slice %2 {offsets = [0, 0], sizes = [4, 1], strides = [1, 1]} : vector<4x4xf32> to vector<4x1xf32>
    %80 = vector.extract_strided_slice %78 {offsets = [0, 0], sizes = [1, 256], strides = [1, 1]} : vector<4x256xf32> to vector<1x256xf32>
    %81 = vector.broadcast %79 : vector<4x1xf32> to vector<4x256xf32>
    %82 = vector.broadcast %80 : vector<1x256xf32> to vector<4x256xf32>
    %83 = arith.mulf %81, %82 : vector<4x256xf32>
    %84 = vector.extract_strided_slice %2 {offsets = [0, 1], sizes = [4, 1], strides = [1, 1]} : vector<4x4xf32> to vector<4x1xf32>
    %85 = vector.extract_strided_slice %78 {offsets = [1, 0], sizes = [1, 256], strides = [1, 1]} : vector<4x256xf32> to vector<1x256xf32>
    %86 = vector.broadcast %84 : vector<4x1xf32> to vector<4x256xf32>
    %87 = vector.broadcast %85 : vector<1x256xf32> to vector<4x256xf32>
    %88 = arith.mulf %86, %87 : vector<4x256xf32>
    %89 = arith.addf %83, %88 : vector<4x256xf32>
    %90 = vector.extract_strided_slice %2 {offsets = [0, 2], sizes = [4, 1], strides = [1, 1]} : vector<4x4xf32> to vector<4x1xf32>
    %91 = vector.extract_strided_slice %78 {offsets = [2, 0], sizes = [1, 256], strides = [1, 1]} : vector<4x256xf32> to vector<1x256xf32>
    %92 = vector.broadcast %90 : vector<4x1xf32> to vector<4x256xf32>
    %93 = vector.broadcast %91 : vector<1x256xf32> to vector<4x256xf32>
    %94 = arith.mulf %92, %93 : vector<4x256xf32>
    %95 = arith.addf %89, %94 : vector<4x256xf32>
    %96 = vector.extract_strided_slice %2 {offsets = [0, 3], sizes = [4, 1], strides = [1, 1]} : vector<4x4xf32> to vector<4x1xf32>
    %97 = vector.extract_strided_slice %78 {offsets = [3, 0], sizes = [1, 256], strides = [1, 1]} : vector<4x256xf32> to vector<1x256xf32>
    %98 = vector.broadcast %96 : vector<4x1xf32> to vector<4x256xf32>
    %99 = vector.broadcast %97 : vector<1x256xf32> to vector<4x256xf32>
    %100 = arith.mulf %98, %99 : vector<4x256xf32>
    %101 = arith.addf %95, %100 : vector<4x256xf32>
    %102 = vector.broadcast %4 : vector<4x1xf32> to vector<4x256xf32>
    %103 = arith.addf %101, %102 : vector<4x256xf32>
    %c0_16 = arith.constant 0 : index
    %c0_17 = arith.constant 0 : index
    %c0_18 = arith.constant 0 : index
    %104 = vector.load %arg4[%c0_16, %c0_17, %c0_18] : memref<2x4x256xf32, #tpu.memory_space<vmem>>, vector<1x4x256xf32>
    %105 = vector.shape_cast %104 : vector<1x4x256xf32> to vector<4x256xf32>
    %106 = vector.shape_cast %103 : vector<4x256xf32> to vector<1x4x256xf32>
    tpu.vector_store %arg4[%c0_16, %c0_17, %c0_18], %106 {strides = array<i32>} : memref<2x4x256xf32, #tpu.memory_space<vmem>>, vector<1x4x256xf32>,
    %c1 = arith.constant 1 : index
    %c0_19 = arith.constant 0 : index
    %c0_20 = arith.constant 0 : index
    %107 = vector.load %arg1[%c1, %c0_19, %c0_20] : memref<2x4x256xf32, #tpu.memory_space<vmem>>, vector<1x4x256xf32>
    %108 = vector.shape_cast %107 : vector<1x4x256xf32> to vector<4x256xf32>
    %c1_21 = arith.constant 1 : index
    %c0_22 = arith.constant 0 : index
    %c0_23 = arith.constant 0 : index
    %109 = vector.load %arg2[%c1_21, %c0_22, %c0_23] : memref<2x4x256xf32, #tpu.memory_space<vmem>>, vector<1x4x256xf32>
    %110 = vector.shape_cast %109 : vector<1x4x256xf32> to vector<4x256xf32>
    %111 = vector.extract_strided_slice %0 {offsets = [0, 0], sizes = [4, 1], strides = [1, 1]} : vector<4x4xf32> to vector<4x1xf32>
    %112 = vector.extract_strided_slice %108 {offsets = [0, 0], sizes = [1, 256], strides = [1, 1]} : vector<4x256xf32> to vector<1x256xf32>
    %113 = vector.broadcast %111 : vector<4x1xf32> to vector<4x256xf32>
    %114 = vector.broadcast %112 : vector<1x256xf32> to vector<4x256xf32>
    %115 = arith.mulf %113, %114 : vector<4x256xf32>
    %116 = vector.extract_strided_slice %0 {offsets = [0, 1], sizes = [4, 1], strides = [1, 1]} : vector<4x4xf32> to vector<4x1xf32>
    %117 = vector.extract_strided_slice %108 {offsets = [1, 0], sizes = [1, 256], strides = [1, 1]} : vector<4x256xf32> to vector<1x256xf32>
    %118 = vector.broadcast %116 : vector<4x1xf32> to vector<4x256xf32>
    %119 = vector.broadcast %117 : vector<1x256xf32> to vector<4x256xf32>
    %120 = arith.mulf %118, %119 : vector<4x256xf32>
    %121 = arith.addf %115, %120 : vector<4x256xf32>
    %122 = vector.extract_strided_slice %0 {offsets = [0, 2], sizes = [4, 1], strides = [1, 1]} : vector<4x4xf32> to vector<4x1xf32>
    %123 = vector.extract_strided_slice %108 {offsets = [2, 0], sizes = [1, 256], strides = [1, 1]} : vector<4x256xf32> to vector<1x256xf32>
    %124 = vector.broadcast %122 : vector<4x1xf32> to vector<4x256xf32>
    %125 = vector.broadcast %123 : vector<1x256xf32> to vector<4x256xf32>
    %126 = arith.mulf %124, %125 : vector<4x256xf32>
    %127 = arith.addf %121, %126 : vector<4x256xf32>
    %128 = vector.extract_strided_slice %0 {offsets = [0, 3], sizes = [4, 1], strides = [1, 1]} : vector<4x4xf32> to vector<4x1xf32>
    %129 = vector.extract_strided_slice %108 {offsets = [3, 0], sizes = [1, 256], strides = [1, 1]} : vector<4x256xf32> to vector<1x256xf32>
    %130 = vector.broadcast %128 : vector<4x1xf32> to vector<4x256xf32>
    %131 = vector.broadcast %129 : vector<1x256xf32> to vector<4x256xf32>
    %132 = arith.mulf %130, %131 : vector<4x256xf32>
    %133 = arith.addf %127, %132 : vector<4x256xf32>
    %134 = vector.extract_strided_slice %1 {offsets = [0, 0], sizes = [4, 1], strides = [1, 1]} : vector<4x4xf32> to vector<4x1xf32>
    %135 = vector.extract_strided_slice %110 {offsets = [0, 0], sizes = [1, 256], strides = [1, 1]} : vector<4x256xf32> to vector<1x256xf32>
    %136 = vector.broadcast %134 : vector<4x1xf32> to vector<4x256xf32>
    %137 = vector.broadcast %135 : vector<1x256xf32> to vector<4x256xf32>
    %138 = arith.mulf %136, %137 : vector<4x256xf32>
    %139 = vector.extract_strided_slice %1 {offsets = [0, 1], sizes = [4, 1], strides = [1, 1]} : vector<4x4xf32> to vector<4x1xf32>
    %140 = vector.extract_strided_slice %110 {offsets = [1, 0], sizes = [1, 256], strides = [1, 1]} : vector<4x256xf32> to vector<1x256xf32>
    %141 = vector.broadcast %139 : vector<4x1xf32> to vector<4x256xf32>
    %142 = vector.broadcast %140 : vector<1x256xf32> to vector<4x256xf32>
    %143 = arith.mulf %141, %142 : vector<4x256xf32>
    %144 = arith.addf %138, %143 : vector<4x256xf32>
    %145 = vector.extract_strided_slice %1 {offsets = [0, 2], sizes = [4, 1], strides = [1, 1]} : vector<4x4xf32> to vector<4x1xf32>
    %146 = vector.extract_strided_slice %110 {offsets = [2, 0], sizes = [1, 256], strides = [1, 1]} : vector<4x256xf32> to vector<1x256xf32>
    %147 = vector.broadcast %145 : vector<4x1xf32> to vector<4x256xf32>
    %148 = vector.broadcast %146 : vector<1x256xf32> to vector<4x256xf32>
    %149 = arith.mulf %147, %148 : vector<4x256xf32>
    %150 = arith.addf %144, %149 : vector<4x256xf32>
    %151 = vector.extract_strided_slice %1 {offsets = [0, 3], sizes = [4, 1], strides = [1, 1]} : vector<4x4xf32> to vector<4x1xf32>
    %152 = vector.extract_strided_slice %110 {offsets = [3, 0], sizes = [1, 256], strides = [1, 1]} : vector<4x256xf32> to vector<1x256xf32>
    %153 = vector.broadcast %151 : vector<4x1xf32> to vector<4x256xf32>
    %154 = vector.broadcast %152 : vector<1x256xf32> to vector<4x256xf32>
    %155 = arith.mulf %153, %154 : vector<4x256xf32>
    %156 = arith.addf %150, %155 : vector<4x256xf32>
    %157 = arith.addf %133, %156 : vector<4x256xf32>
    %158 = vector.broadcast %3 : vector<4x1xf32> to vector<4x256xf32>
    %159 = arith.addf %157, %158 : vector<4x256xf32>
    %cst_24 = arith.constant 0.000000e+00 : f32
    %160 = vector.broadcast %cst_24 : f32 to vector<4x256xf32>
    %161 = arith.maximumf %159, %160 : vector<4x256xf32>
    %162 = vector.broadcast %5 : vector<4x1xf32> to vector<4x256xf32>
    %163 = arith.mulf %161, %162 : vector<4x256xf32>
    %cst_25 = arith.constant dense<0.000000e+00> : vector<256xf32>
    %164 = vector.multi_reduction <add>, %163, %cst_25 [0] : vector<4x256xf32> to vector<256xf32>
    %165 = vector.shape_cast %164 : vector<256xf32> to vector<1x256xf32>
    %166 = vector.broadcast %6 : vector<1x1xf32> to vector<1x256xf32>
    %167 = arith.addf %165, %166 : vector<1x256xf32>
    %cst_26 = arith.constant dense<0x7F800000> : vector<1xf32>
    %168 = vector.multi_reduction <minimumf>, %167, %cst_26 [1] : vector<1x256xf32> to vector<1xf32>
    %169 = vector.shape_cast %168 : vector<1xf32> to vector<1x1xf32>
    %cst_27 = arith.constant dense<0xFF800000> : vector<1xf32>
    %170 = vector.multi_reduction <maximumf>, %167, %cst_27 [1] : vector<1x256xf32> to vector<1xf32>
    %171 = vector.shape_cast %170 : vector<1xf32> to vector<1x1xf32>
    %172 = vector.broadcast %169 : vector<1x1xf32> to vector<1x256xf32>
    %173 = arith.subf %167, %172 : vector<1x256xf32>
    %174 = arith.subf %171, %169 : vector<1x1xf32>
    %175 = vector.broadcast %174 : vector<1x1xf32> to vector<1x256xf32>
    %176 = arith.divf %173, %175 : vector<1x256xf32>
    %177 = vector.broadcast %176 : vector<1x256xf32> to vector<4x256xf32>
    %178 = arith.mulf %177, %108 : vector<4x256xf32>
    %179 = vector.extract_strided_slice %2 {offsets = [0, 0], sizes = [4, 1], strides = [1, 1]} : vector<4x4xf32> to vector<4x1xf32>
    %180 = vector.extract_strided_slice %178 {offsets = [0, 0], sizes = [1, 256], strides = [1, 1]} : vector<4x256xf32> to vector<1x256xf32>
    %181 = vector.broadcast %179 : vector<4x1xf32> to vector<4x256xf32>
    %182 = vector.broadcast %180 : vector<1x256xf32> to vector<4x256xf32>
    %183 = arith.mulf %181, %182 : vector<4x256xf32>
    %184 = vector.extract_strided_slice %2 {offsets = [0, 1], sizes = [4, 1], strides = [1, 1]} : vector<4x4xf32> to vector<4x1xf32>
    %185 = vector.extract_strided_slice %178 {offsets = [1, 0], sizes = [1, 256], strides = [1, 1]} : vector<4x256xf32> to vector<1x256xf32>
    %186 = vector.broadcast %184 : vector<4x1xf32> to vector<4x256xf32>
    %187 = vector.broadcast %185 : vector<1x256xf32> to vector<4x256xf32>
    %188 = arith.mulf %186, %187 : vector<4x256xf32>
    %189 = arith.addf %183, %188 : vector<4x256xf32>
    %190 = vector.extract_strided_slice %2 {offsets = [0, 2], sizes = [4, 1], strides = [1, 1]} : vector<4x4xf32> to vector<4x1xf32>
    %191 = vector.extract_strided_slice %178 {offsets = [2, 0], sizes = [1, 256], strides = [1, 1]} : vector<4x256xf32> to vector<1x256xf32>
    %192 = vector.broadcast %190 : vector<4x1xf32> to vector<4x256xf32>
    %193 = vector.broadcast %191 : vector<1x256xf32> to vector<4x256xf32>
    %194 = arith.mulf %192, %193 : vector<4x256xf32>
    %195 = arith.addf %189, %194 : vector<4x256xf32>
    %196 = vector.extract_strided_slice %2 {offsets = [0, 3], sizes = [4, 1], strides = [1, 1]} : vector<4x4xf32> to vector<4x1xf32>
    %197 = vector.extract_strided_slice %178 {offsets = [3, 0], sizes = [1, 256], strides = [1, 1]} : vector<4x256xf32> to vector<1x256xf32>
    %198 = vector.broadcast %196 : vector<4x1xf32> to vector<4x256xf32>
    %199 = vector.broadcast %197 : vector<1x256xf32> to vector<4x256xf32>
    %200 = arith.mulf %198, %199 : vector<4x256xf32>
    %201 = arith.addf %195, %200 : vector<4x256xf32>
    %202 = vector.broadcast %4 : vector<4x1xf32> to vector<4x256xf32>
    %203 = arith.addf %201, %202 : vector<4x256xf32>
    %c1_28 = arith.constant 1 : index
    %c0_29 = arith.constant 0 : index
    %c0_30 = arith.constant 0 : index
    %204 = vector.load %arg4[%c1_28, %c0_29, %c0_30] : memref<2x4x256xf32, #tpu.memory_space<vmem>>, vector<1x4x256xf32>
    %205 = vector.shape_cast %204 : vector<1x4x256xf32> to vector<4x256xf32>
    %206 = vector.shape_cast %203 : vector<4x256xf32> to vector<1x4x256xf32>
    tpu.vector_store %arg4[%c1_28, %c0_29, %c0_30], %206 {strides = array<i32>} : memref<2x4x256xf32, #tpu.memory_space<vmem>>, vector<1x4x256xf32>,
    return
  }
  func.func @transform_0(%arg0: i32) -> (i32, i32, i32) {
    %c0_i32 = arith.constant 0 : i32
    %c0_i32_0 = arith.constant 0 : i32
    %c0_i32_1 = arith.constant 0 : i32
    return %arg0, %c0_i32, %c0_i32_0 : i32, i32, i32
  }
  func.func @transform_1(%arg0: i32) -> (i32, i32, i32) {
    %c0_i32 = arith.constant 0 : i32
    %c0_i32_0 = arith.constant 0 : i32
    %c0_i32_1 = arith.constant 0 : i32
    return %arg0, %c0_i32, %c0_i32_0 : i32, i32, i32
  }
  func.func @transform_2(%arg0: i32) -> (i32, i32) {
    %c0_i32 = arith.constant 0 : i32
    %c0_i32_0 = arith.constant 0 : i32
    %c0_i32_1 = arith.constant 0 : i32
    return %c0_i32, %c0_i32_0 : i32, i32
  }
  func.func @transform_3(%arg0: i32) -> (i32, i32, i32) {
    %c0_i32 = arith.constant 0 : i32
    %c0_i32_0 = arith.constant 0 : i32
    %c0_i32_1 = arith.constant 0 : i32
    return %arg0, %c0_i32, %c0_i32_0 : i32, i32, i32
  }
}

</mosaic_0001>

<bundles_post_ra>
// kernel: tpu_custom_call.1
= control target key start
LH: loop header
LB: loop body
LE: loop exit
PB: predicated region body
PF: predicated region fallthrough
CT: control target
= control target key end

     0   :  { %8 = vsyncpa [#allocation3], 0  ;;  %s980_s0 = inlined_call_operand.hbm [shape: f32[2,4,256], index: 0, kind: input, shape index: {}]   ;;  %s981_s1 = inlined_call_operand.hbm [shape: f32[2,4,256], index: 1, kind: input, shape index: {}]   ;;  %s982_s2 = inlined_call_operand.hbm [shape: f32[4,512], index: 2, kind: input, shape index: {}]   ;;  %s983_s3 = inlined_call_operand.hbm [shape: f32[2,4,256], index: 3, kind: output, shape index: {}]  }
   0x1   :  { %9 = vsyncpa [#allocation6], 0 }
   0x2   :  { %10 = vsyncpa [#allocation4], 0  ;;  %s28_s14 = sshll.u32 %s981_s1, 4  ;;  %s771_s15 = smov [#allocation5]   ;;  %s29_s14 = int_to_ptr.hbm [resolvable:$true] %s28_s14 }
   0x3   :  { %s30_s16 = sshll.u32 %s771_s15, 4  ;;  %s15_s19 = sshll.u32 %s980_s0, 4  ;;  %s31_s16 = int_to_ptr.vmem [resolvable:$true] %s30_s16  ;;  %s16_s19 = int_to_ptr.hbm [resolvable:$true] %s15_s19 }
   0x4   :  { %s772_s20 = smov 128   ;;  %s773_s21 = smov 8  }
   0x5   :  { %36 = dma.hbm_to_vmem [thread:$0]  %s29_s14, 256, %s31_s16, [#allocation6], %s772_s20, %s772_s20, %s773_s21  }
   0x6   :  { %s774_s22 = smov [#allocation2]   ;;  %s42_s1 = sshll.u32 %s982_s2, 4  ;;  %s43_s1 = int_to_ptr.hbm [resolvable:$true] %s42_s1 }
   0x7   :  { %s17_s23 = sshll.u32 %s774_s22, 4  ;;  %s775_s0 = smov [#allocation7]   ;;  %s18_s23 = int_to_ptr.vmem [resolvable:$true] %s17_s23 }
   0x8   :  { %23 = dma.hbm_to_vmem [thread:$0]  %s16_s19, 256, %s18_s23, [#allocation3], %s772_s20, %s772_s20, %s773_s21  }
   0x9   :  { %s44_s26 = sshll.u32 %s775_s0, 4  ;;  %s45_s26 = int_to_ptr.vmem [resolvable:$true] %s44_s26 }
   0xa   :  { %47 = dma.hbm_to_vmem [thread:$0]  %s43_s1, 256, %s45_s26, [#allocation6]  }
   0xb   :  { %765 = dma.done.wait [#allocation3], 256  }
   0xc   :  { %766 = vsyncadd [#allocation3], 4294967040 }
   0xd   :  { %767 = dma.done.wait [#allocation6], 512  }
   0xe   :  { %768 = vsyncadd [#allocation6], 4294966784  ;;  %v776_v0 = vmov 0   ;;  %v777_v1 = vmov 2   ;;  %v61_v2 = vld [vmem:[#allocation7 + $0x4] sm:$0xf] }
   0xf   :  { %653 = vset.pattern.permute.xlu1 %v776_v0  ;;  %651 = vset.pattern.permute.xlu0 %v776_v0  ;;  %v60_v3 = vld [vmem:[#allocation7] sm:$0xf]  ;;  %v778_v4 = vmov 1   ;;  %v819_v5 = vld [vmem:[#allocation7 + $0xc] sm:$0xf]  ;;  %v779_v6 = vmov 3  }
  0x10   :  { %655 = vset.pattern.permute.xlu2 %v777_v1  ;;  %155 = vperm.xlu1 %653, %v61_v2   ;;  %v64_v7 = vld [vmem:[#allocation7 + $0xc] sm:$0x1]  ;;  %v824_v8 = vld [vmem:[#allocation7 + $0x8] sm:$0xf]  ;;  %v826_v9 = vld [vmem:[#allocation2] sm:$0xff]  ;;  %vm86_vm0 = vcmask 1043456  }
  0x11   :  { %69 = vperm.xlu0 %651, %v60_v3   ;;  %112 = vperm.xlu2 %655, %v60_v3   ;;  %v830_v10 = vld [vmem:[#allocation5] sm:$0xff]  ;;  %v120_v11 = vperm.slane %v826_v9, 6  ;;  %v833_v12 = vld [vmem:[#allocation5 + $0x8] sm:$0xff]  ;;  %v835_v13 = vld [vmem:[#allocation2 + $0x8] sm:$0xff]  ;;  %v119_v16 = vperm.slane %v826_v9, 2  ;;  %v99_v34 = vperm.slane %v826_v9, 5 }
  0x12   :  { %v164_v14 = vperm.slane %v830_v10, 4  ;;  %v468_v15 = vperm.slane %v833_v12, 4  ;;  %v441_v18 = vperm.slane %v835_v13, 6  ;;  %v163_v19 = vperm.slane %v830_v10, 0  ;;  %s781_s2 = smov [#allocation8]   ;;  %s626_s30 = sshll.u32 %s983_s3, 4  ;;  %s627_s30 = int_to_ptr.hbm [resolvable:$true] %s626_s30 }
  0x13   :  { %v124_v17 = vperm.slane %v120_v11, 2  ;;  %v205_v22 = vperm.slane %v830_v10, 6  ;;  %v780_v23 = vmov 839922192   ;;  %v467_v25 = vperm.slane %v833_v12, 0  ;;  %s624_s27 = sshll.u32 %s781_s2, 4  ;;  %s625_s27 = int_to_ptr.vmem [resolvable:$true] %s624_s27 }
  0x14   :  { %v168_v20 = vperm.slane %v164_v14, 0  ;;  %v73_v24 = vunpack.c.l.s4 %v780_v23  ;;  %v472_v26 = vperm.slane %v468_v15, 0  ;;  %v123_v27 = vperm.slane %v119_v16, 2 }
  0x15   :  { %v127_v28 = vrot.slane %v124_v17, 4  ;;  %v440_v29 = vperm.slane %v835_v13, 2  ;;  %v847_v30 = vperm.slane %v441_v18, 2  ;;  %v167_v31 = vperm.slane %v163_v19, 0 }
  0x16   :  { %v171_v32 = vrot.slane %v168_v20, 4  ;;  %v184_v33 = vperm.slane %v830_v10, 5  ;;  %v204_v35 = vperm.slane %v830_v10, 2  ;;  %v209_v36 = vperm.slane %v205_v22, 2 }
  0x17   :  { %v852_v37 = vunpack.c.0.s8 %v73_v24  ;;  %v471_v38 = vperm.slane %v467_v25, 0  ;;  %v475_v39 = vrot.slane %v472_v26, 4  ;;  %v78_v40 = vperm.slane %v826_v9, 4 }
  0x18   :  { %654 = vset.pattern.permute.xlu1 %v778_v4  ;;  %v856_v41 = vsel %vm86_vm0, %v123_v27, %v127_v28  ;;  %v858_v42 = vperm.slane %v440_v29, 2  ;;  %v448_v43 = vrot.slane %v847_v30, 4  ;;  %v183_v46 = vperm.slane %v830_v10, 1 }
  0x19   :  { %652 = vset.pattern.permute.xlu0 %v778_v4  ;;  %176 = vperm.xlu1 %654, %v61_v2   ;;  %v172_v47 = vsel %vm86_vm0, %v167_v31, %v171_v32  ;;  %v188_v48 = vperm.slane %v184_v33, 1  ;;  %v98_v49 = vperm.slane %v826_v9, 1  ;;  %v103_v50 = vperm.slane %v99_v34, 1 }
  0x1a   :  { %91 = vperm.xlu0 %652, %v60_v3   ;;  %197 = vperm.xlu2 %655, %v61_v2   ;;  %v208_v51 = vperm.slane %v204_v35, 2  ;;  %v212_v52 = vrot.slane %v209_v36, 4  ;;  %v493_v53 = vperm.slane %v833_v12, 6  ;;  %v416_v54 = vperm.slane %v835_v13, 4 }
  0x1b   :  { %v867_v55 = vsel %vm86_vm0, %v471_v38, %v475_v39  ;;  %v77_v56 = vperm.slane %v826_v9, 0  ;;  %v82_v57 = vperm.slane %v78_v40, 0  ;;  %v480_v58 = vperm.slane %v833_v12, 5 }
  0x1c   :  { %v492_v59 = vperm.slane %v833_v12, 2  ;;  %v415_v61 = vperm.slane %v835_v13, 0  ;;  %v187_v62 = vperm.slane %v183_v46, 1  ;;  %v226_v63 = vperm.slane %v830_v10, 7 }
  0x1d   :  { %v420_v11 = vperm.slane %v416_v54, 0  ;;  %v141_v14 = vperm.slane %v826_v9, 7  ;;  %v81_v15 = vperm.slane %v77_v56, 0  ;;  %v85_v16 = vrot.slane %v82_v57, 4 }
  0x1e   :  { %v479_v17 = vperm.slane %v833_v12, 1  ;;  %v484_v18 = vperm.slane %v480_v58, 1  ;;  %v419_v19 = vperm.slane %v415_v61, 0  ;;  %v427_v20 = vperm.slane %v835_v13, 1 }
  0x1f   :  { %v225_v22 = vperm.slane %v830_v10, 3  ;;  %v230_v23 = vperm.slane %v226_v63, 3  ;;  %v140_v33 = vperm.slane %v826_v9, 3  ;;  %v145_v34 = vperm.slane %v141_v14, 3 }
  0x20   :  { %v87_v35 = vsel %vm86_vm0, %v81_v15, %v85_v16  ;;  %v483_v36 = vperm.slane %v479_v17, 1  ;;  %v487_v38 = vrot.slane %v484_v18, 4  ;;  %v454_v46 = vperm.slane %v835_v13, 7 }
  0x21   :  { %656 = vset.pattern.permute.xlu1 %v779_v6  ;;  %v229_v40 = vperm.slane %v225_v22, 3  ;;  %v144_v56 = vperm.slane %v140_v33, 3  ;;  %v148_v57 = vrot.slane %v145_v34, 4  ;;  %v423_v63 = vrot.slane %v420_v11, 4 }
  0x22   :  { %658 = vset.pattern.permute.xlu0 %v776_v0  ;;  %133 = vperm.xlu1 %656, %v60_v3   ;;  %v428_v3 = vperm.slane %v835_v13, 5  ;;  %v505_v16 = vperm.slane %v833_v12, 3  ;;  %vm293_vm1 = vcmask 1040384  }
  0x23   :  { %241 = vperm.xlu0 %658, %v819_v5   ;;  %657 = vset.pattern.permute.xlu2 %v779_v6  ;;  %v149_v17 = vsel %vm86_vm0, %v144_v56, %v148_v57 }
  0x24   :  { %218 = vperm.xlu2 %657, %v61_v2   ;;  %v106_v2 = vrot.slane %v103_v50, 4  ;;  %v432_v28 = vperm.slane %v428_v3, 1  ;;  %v431_v50 = vperm.slane %v427_v20, 1  ;;  %v488_v3 = vsel %vm86_vm0, %v483_v36, %v487_v38 }
  0x2a   :  { %659 = vset.pattern.permute.xlu1 %v777_v1 }
  0x2b   :  { %662 = vset.pattern.permute.xlu0 %v777_v1  ;;  %251 = vperm.xlu1 %659, %v819_v5   ;;  %v102_v1 = vperm.slane %v98_v49, 1 }
  0x2c   :  { %281 = vperm.xlu2 %657, %v64_v7   ;;  %v876_v7 = vperm.slane %v493_v53, 2  ;;  %v506_v53 = vperm.slane %v833_v12, 7 }
  0x2d   :  { %v107_v27 = vsel %vm86_vm0, %v102_v1, %v106_v2  ;;  %v496_v1 = vperm.slane %v492_v59, 2 }
  0x2e   :  { %v500_v59 = vrot.slane %v876_v7, 4  ;;  %v449_v7 = vsel %vm86_vm0, %v858_v42, %v448_v43 }
  0x33   :  { %660 = vset.pattern.permute.xlu1 %v776_v0  ;;  %v191_v0 = vrot.slane %v188_v48, 4 }
  0x34   :  { %661 = vset.pattern.permute.xlu2 %v778_v4  ;;  %334 = vperm.xlu1 %660, %v824_v8  }
  0x35   :  { %350 = vperm.xlu2 %661, %v824_v8   ;;  %v192_v25 = vsel %vm86_vm0, %v187_v62, %v191_v0  ;;  %v458_v0 = vperm.slane %v454_v46, 3 }
  0x3c   :  { %663 = vset.pattern.permute.xlu1 %v779_v6  ;;  %v213_v6 = vsel %vm86_vm0, %v208_v51, %v212_v52  ;;  %v435_v52 = vrot.slane %v432_v28, 4 }
  0x3e   :  { %v436_v15 = vsel %vm86_vm0, %v431_v50, %v435_v52 }
  0x6b   :  { %v842_v21 = vpop.permute.xlu2 %112 }
  0x74   :  { %v198_v60 = vpop.permute.xlu2 %197 }
  0x75   :  { %v203_v49 = vperm.slane %v198_v60, %v852_v37  ;;  %v453_v60 = vperm.slane %v835_v13, 3 }
  0x77   :  { %v215_v2 = vmul.f32 %v213_v6, %v203_v49  ;;  %v424_v6 = vsel %vm86_vm0, %v419_v19, %v423_v63  ;;  %v501_v19 = vsel %vm86_vm0, %v496_v1, %v500_v59 }
  0x7e   :  { %v219_v54 = vpop.permute.xlu2 %218 }
  0x7f   :  { %v224_v62 = vperm.slane %v219_v54, %v852_v37 }
  0x82   :  { %v156_v44 = vpop.permute.xlu1 %155 }
  0x83   :  { %v70_v45 = vpop.permute.xlu0 %69  ;;  %v161_v24 = vperm.slane %v156_v44, %v852_v37  ;;  %v233_v44 = vrot.slane %v230_v23, 4 }
  0x84   :  { %v75_v10 = vperm.slane %v70_v45, %v852_v37  ;;  %v118_v45 = vperm.slane %v842_v21, %v852_v37  ;;  %v510_v21 = vperm.slane %v506_v53, 3 }
  0x85   :  { %v174_v48 = vmul.f32 %v172_v47, %v161_v24  ;;  %v234_v47 = vsel %vm86_vm0, %v229_v40, %v233_v44  ;;  %v478_v34 = vmul.f32 %v867_v55, %v161_v24 }
  0x86   :  { %v89_v58 = vmul.f32 %v87_v35, %v75_v10  ;;  %v130_v11 = vmul.f32 %v856_v41, %v118_v45  ;;  %v236_v22 = vmul.f32 %v234_v47, %v224_v62  ;;  %v509_v35 = vperm.slane %v505_v16, 3 }
  0x87   :  { %v513_v36 = vrot.slane %v510_v21, 4  ;;  %v426_v41 = vmul.f32 %v424_v6, %v75_v10  ;;  %v451_v24 = vmul.f32 %v449_v7, %v118_v45  ;;  %v503_v10 = vmul.f32 %v501_v19, %v203_v49 }
  0x89   :  { %v514_v55 = vsel %vm86_vm0, %v509_v35, %v513_v36 }
  0x8a   :  { %v516_v53 = vmul.f32 %v514_v55, %v224_v62 }
  0x8b   :  { %v177_v26 = vpop.permute.xlu1 %176 }
  0x8c   :  { %v92_v29 = vpop.permute.xlu0 %91  ;;  %v182_v31 = vperm.slane %v177_v26, %v852_v37  ;;  %v461_v26 = vrot.slane %v458_v0, 4 }
  0x8d   :  { %v97_v32 = vperm.slane %v92_v29, %v852_v37 }
  0x8e   :  { %v194_v39 = vmul.f32 %v192_v25, %v182_v31  ;;  %v457_v25 = vperm.slane %v453_v60, 3  ;;  %v490_v28 = vmul.f32 %v488_v3, %v182_v31  ;;  %v282_v3 = vpop.permute.xlu2 %281 }
  0x8f   :  { %v109_v51 = vmul.f32 %v107_v27, %v97_v32  ;;  %v438_v29 = vmul.f32 %v436_v15, %v97_v32  ;;  %v287_v21 = vperm.slane %v282_v3, %v852_v37 }
  0x90   :  { %v195_v61 = vadd.f32 %v194_v39, %v174_v48  ;;  %v462_v31 = vsel %vm86_vm0, %v457_v25, %v461_v26  ;;  %v491_v32 = vadd.f32 %v490_v28, %v478_v34 }
  0x91   :  { %v110_v14 = vadd.f32 %v109_v51, %v89_v58  ;;  %v439_v44 = vadd.f32 %v438_v29, %v426_v41 }
  0x92   :  { %v216_v20 = vadd.f32 %v215_v2, %v195_v61  ;;  %v504_v30 = vadd.f32 %v503_v10, %v491_v32 }
  0x93   :  { %v131_v12 = vadd.f32 %v130_v11, %v110_v14  ;;  %v452_v54 = vadd.f32 %v451_v24, %v439_v44 }
  0x94   :  { %v134_v18 = vpop.permute.xlu1 %133  ;;  %v237_v38 = vadd.f32 %v236_v22, %v216_v20  ;;  %v517_v57 = vadd.f32 %v516_v53, %v504_v30 }
  0x95   :  { %v139_v23 = vperm.slane %v134_v18, %v852_v37  ;;  %v242_v27 = vpop.permute.xlu0 %241 }
  0x96   :  { %v247_v40 = vperm.slane %v242_v27, %v852_v37 }
  0x97   :  { %v151_v33 = vmul.f32 %v149_v17, %v139_v23  ;;  %v464_v48 = vmul.f32 %v462_v31, %v139_v23  ;;  %v289_v23 = vperm.slane %v287_v21, 0 }
  0x99   :  { %v152_v39 = vadd.f32 %v151_v33, %v131_v12  ;;  %v465_v43 = vadd.f32 %v464_v48, %v452_v54 }
  0x9b   :  { %v238_v46 = vadd.f32 %v237_v38, %v152_v39  ;;  %v518_v58 = vadd.f32 %v517_v57, %v465_v43  ;;  %v351_v43 = vpop.permute.xlu2 %350 }
  0x9d   :  { %v248_v50 = vadd.f32 %v247_v40, %v238_v46  ;;  %v252_v51 = vpop.permute.xlu1 %251  ;;  %v519_v61 = vadd.f32 %v518_v58, %v247_v40 }
  0x9e   :  { %v257_v52 = vperm.slane %v252_v51, %v852_v37 }
  0x9f   :  { %v249_v42 = vmax.f32 %v248_v50, 0.0  ;;  %v520_v1 = vmax.f32 %v519_v61, 0.0 }
  0xa1   :  { %v258_v56 = vmul.f32 %v257_v52, %v249_v42  ;;  %v521_v16 = vmul.f32 %v520_v1, %v257_v52 }
  0xa3   :  { %260 = vst [vmem:[#allocation1] ss:$2 sm:$0xff] %v258_v56 }
  0xa6   :  { %v335_v56 = vpop.permute.xlu1 %334 }
  0xaa   :  { %v261_v63 = vld.sshfl [vmem:[#allocation1] sm:$0xff pattern:$0x75316420]  ;;  %v262_v47 = vld.sshfl [vmem:[#allocation1 + $0x8] sm:$0xff pattern:$0x75316420] }
  0xab   :  { %325 = vst [vmem:[#allocation1] ss:$2 sm:$0xff] %v826_v9  ;;  %v265_v49 = vsel %vm86_vm0, %v261_v63, 0.0  ;;  %v272_v45 = vsel %vm86_vm0, %v262_v47, 0.0 }
  0xac   :  { %v266_v60 = vrot.slane %v265_v49, 4  ;;  %v273_v0 = vrot.slane %v272_v45, 4 }
  0xae   :  { %v267_v62 = vadd.f32 %v266_v60, %v265_v49  ;;  %v274_v2 = vadd.f32 %v273_v0, %v272_v45 }
  0xb0   :  { %v268_v14 = vrot.slane %v267_v62, 2  ;;  %v275_v15 = vrot.slane %v274_v2, 2 }
  0xb2   :  { %v920_v17 = vld.sshfl [vmem:[#allocation1] sm:$0xff pattern:$0x75316420]  ;;  %v922_v18 = vld.sshfl [vmem:[#allocation1 + $0x8] sm:$0xff pattern:$0x75316420]  ;;  %v269_v9 = vadd.f32 %v268_v14, %v267_v62  ;;  %v276_v11 = vadd.f32 %v275_v15, %v274_v2 }
  0xb3   :  { %523 = vst [vmem:[#allocation1] ss:$2 sm:$0xff] %v521_v16 }
  0xb4   :  { %v270_v20 = vrot.slane %v269_v9, 1  ;;  %v277_v22 = vrot.slane %v276_v11, 1 }
  0xb6   :  { %v271_v59 = vadd.f32 %v270_v20, %v269_v9  ;;  %v278_v6 = vadd.f32 %v277_v22, %v276_v11 }
  0xb8   :  { %v924_v25 = vadd.f32 %v289_v23, %v271_v59  ;;  %v926_v26 = vadd.f32 %v289_v23, %v278_v6 }
  0xba   :  { %v299_v27 = vsel %vm293_vm1, %v924_v25, -inf  ;;  %v300_v28 = vsel %vm293_vm1, %v926_v26, -inf  ;;  %v294_v29 = vsel %vm293_vm1, %v924_v25, inf  ;;  %v295_v12 = vsel %vm293_vm1, %v926_v26, inf }
  0xbb   :  { %v301_v33 = vmax.f32 %v299_v27, %v300_v28  ;;  %v296_v34 = vmin.f32 %v294_v29, %v295_v12  ;;  %v524_v35 = vld.sshfl [vmem:[#allocation1] sm:$0xff pattern:$0x75316420]  ;;  %v525_v36 = vld.sshfl [vmem:[#allocation1 + $0x8] sm:$0xff pattern:$0x75316420] }
  0xbc   :  { %v528_v41 = vsel %vm86_vm0, %v524_v35, 0.0  ;;  %v535_v38 = vsel %vm86_vm0, %v525_v36, 0.0  ;;  %575 = vst [vmem:[#allocation1] ss:$2 sm:$0xff] %v835_v13 }
  0xbd   :  { %302 = vmax.xlane.f32.xlu2 %v301_v33  ;;  %297 = vmin.xlane.f32.xlu1 %v296_v34  ;;  %v529_v39 = vrot.slane %v528_v41, 4  ;;  %v536_v40 = vrot.slane %v535_v38, 4 }
  0xbf   :  { %v530_v7 = vadd.f32 %v529_v39, %v528_v41  ;;  %v537_v19 = vadd.f32 %v536_v40, %v535_v38  ;;  %v356_v38 = vperm.slane %v351_v43, %v852_v37  ;;  %v340_v39 = vperm.slane %v335_v56, %v852_v37 }
  0xc1   :  { %v531_v31 = vrot.slane %v530_v7, 2  ;;  %v538_v32 = vrot.slane %v537_v19, 2 }
  0xc3   :  { %v532_v44 = vadd.f32 %v531_v31, %v530_v7  ;;  %v539_v46 = vadd.f32 %v538_v32, %v537_v19  ;;  %v576_v43 = vld.sshfl [vmem:[#allocation1] sm:$0xff pattern:$0x75316420]  ;;  %v577_v56 = vld.sshfl [vmem:[#allocation1 + $0x8] sm:$0xff pattern:$0x75316420] }
  0xc5   :  { %v533_v55 = vrot.slane %v532_v44, 1  ;;  %v540_v24 = vrot.slane %v539_v46, 1 }
  0xc7   :  { %v534_v10 = vadd.f32 %v533_v55, %v532_v44  ;;  %v541_v48 = vadd.f32 %v540_v24, %v539_v46 }
  0xc9   :  { %v939_v50 = vadd.f32 %v534_v10, %v289_v23  ;;  %v941_v51 = vadd.f32 %v541_v48, %v289_v23 }
  0xcb   :  { %v544_v13 = vsel %vm293_vm1, %v939_v50, inf  ;;  %v545_v52 = vsel %vm293_vm1, %v941_v51, inf  ;;  %v549_v30 = vsel %vm293_vm1, %v939_v50, -inf  ;;  %v550_v53 = vsel %vm293_vm1, %v941_v51, -inf }
  0xcc   :  { %v546_v54 = vmin.f32 %v544_v13, %v545_v52  ;;  %v551_v42 = vmax.f32 %v549_v30, %v550_v53 }
  0xce   :  { %547 = vmin.xlane.f32.xlu0 %v546_v54  ;;  %552 = vmax.xlane.f32.xlu2 %v551_v42 }
  0xd6   :  { %384 = vperm.xlu1 %663, %v824_v8  }
  0xe2   :  { %367 = vperm.xlu0 %662, %v824_v8  }
  0xe6   :  { %401 = vperm.xlu2 %661, %v819_v5  }
  0xea   :  { %664 = vset.pattern.permute.xlu0 %v778_v4 }
 0x130   :  { %v303_v57 = vpop.xlane.xlu2 %302  ;;  %v298_v58 = vpop.xlane.xlu1 %297 }
 0x131   :  { %v306_v61 = vsub.f32 %v303_v57, %v298_v58  ;;  %v304_v8 = vsub.f32 %v924_v25, %v298_v58  ;;  %v305_v2 = vsub.f32 %v926_v26, %v298_v58 }
 0x133   :  { %665 = vrcp.f32 %v306_v61  ;;  %v318_v45 = vand.u32 2147483648, %v306_v61  ;;  %v316_v0 = vand.u32 2147483647, %v306_v61  ;;  %vm312_vm3 = vweird.f32 %v306_v61 }
 0x135   :  { %v319_v5 = vor.u32 1.1754944e-38, %v318_v45  ;;  %vm317_vm5 = vcmp.eq.f32.partialorder %v316_v0, 8.507059e+37 }
 0x139   :  { %v666_v63 = vpop.eup %665 }
 0x13a   :  { %v308_v47 = vmul.f32 %v666_v63, %v306_v61  ;;  %vm313_vm2 = vweird.f32 %v666_v63 }
 0x13b   :  { %vm314_vm4 = vmor %vm312_vm3, %vm313_vm2 }
 0x13c   :  { %v309_v49 = vsub.f32 1.0, %v308_v47 }
 0x13e   :  { %v310_v60 = vmul.f32 %v666_v63, %v309_v49 }
 0x140   :  { %v311_v1 = vadd.f32 %v666_v63, %v310_v60 }
 0x141   :  { %v548_v4 = vpop.xlane.xlu0 %547  ;;  %v553_v62 = vpop.xlane.xlu2 %552 }
 0x142   :  { %v315_v3 = vsel %vm314_vm4, %v666_v63, %v311_v1  ;;  %v556_v14 = vsub.f32 %v553_v62, %v548_v4  ;;  %v554_v40 = vsub.f32 %v939_v50, %v548_v4  ;;  %v555_v19 = vsub.f32 %v941_v51, %v548_v4 }
 0x143   :  { %v320_v15 = vsel %vm317_vm5, %v319_v5, %v315_v3 }
 0x144   :  { %v321_v16 = vmul.f32 %v320_v15, %v304_v8  ;;  %v322_v21 = vmul.f32 %v320_v15, %v305_v2  ;;  %667 = vrcp.f32 %v556_v14  ;;  %v568_v28 = vand.u32 2147483648, %v556_v14 }
 0x145   :  { %v566_v41 = vand.u32 2147483647, %v556_v14  ;;  %vm562_vm7 = vweird.f32 %v556_v14 }
 0x146   :  { %v323_v9 = vperm.slane %v321_v16, 0  ;;  %v324_v11 = vperm.slane %v322_v21, 0  ;;  %v569_v31 = vor.u32 1.1754944e-38, %v568_v28 }
 0x147   :  { %vm567_vm9 = vcmp.eq.f32.partialorder %v566_v41, 8.507059e+37 }
 0x148   :  { %v331_v20 = vmul.f32 %v922_v18, %v324_v11  ;;  %v330_v23 = vmul.f32 %v920_v17, %v323_v9  ;;  %v385_v44 = vpop.permute.xlu1 %384 }
 0x149   :  { %v390_v50 = vperm.slane %v385_v44, %v852_v37  ;;  %v402_v49 = vpop.permute.xlu2 %401 }
 0x14a   :  { %v668_v22 = vpop.eup %667  ;;  %v342_v6 = vperm.slane %v331_v20, 0  ;;  %v358_v25 = vperm.slane %v331_v20, 1  ;;  %v392_v26 = vperm.slane %v331_v20, 3  ;;  %v341_v12 = vperm.slane %v330_v23, 0 }
 0x14b   :  { %v558_v59 = vmul.f32 %v668_v22, %v556_v14  ;;  %v357_v33 = vperm.slane %v330_v23, 1  ;;  %v375_v35 = vperm.slane %v331_v20, 2  ;;  %vm563_vm6 = vweird.f32 %v668_v22 }
 0x14c   :  { %v345_v29 = vrot.slane %v342_v6, 4  ;;  %v361_v34 = vrot.slane %v358_v25, 4  ;;  %vm564_vm8 = vmor %vm562_vm7, %vm563_vm6  ;;  %v395_v32 = vrot.slane %v392_v26, 4  ;;  %v391_v13 = vperm.slane %v330_v23, 3 }
 0x14d   :  { %v559_v27 = vsub.f32 1.0, %v558_v59  ;;  %v378_v46 = vrot.slane %v375_v35, 4  ;;  %v374_v30 = vperm.slane %v330_v23, 2  ;;  %v407_v8 = vperm.slane %v402_v49, %v852_v37 }
 0x14e   :  { %v346_v18 = vsel %vm86_vm0, %v341_v12, %v345_v29  ;;  %v362_v17 = vsel %vm86_vm0, %v357_v33, %v361_v34  ;;  %v396_v51 = vsel %vm86_vm0, %v391_v13, %v395_v32 }
 0x14f   :  { %v560_v36 = vmul.f32 %v668_v22, %v559_v27  ;;  %v348_v24 = vmul.f32 %v346_v18, %v340_v39  ;;  %v364_v10 = vmul.f32 %v362_v17, %v356_v38  ;;  %v379_v57 = vsel %vm86_vm0, %v374_v30, %v378_v46 }
 0x150   :  { %v398_v0 = vmul.f32 %v396_v51, %v390_v50 }
 0x151   :  { %v561_v7 = vadd.f32 %v668_v22, %v560_v36  ;;  %v365_v63 = vadd.f32 %v364_v10, %v348_v24 }
 0x153   :  { %v565_v55 = vsel %vm564_vm8, %v668_v22, %v561_v7 }
 0x154   :  { %v570_v48 = vsel %vm567_vm9, %v569_v31, %v565_v55  ;;  %v368_v52 = vpop.permute.xlu0 %367 }
 0x155   :  { %v571_v53 = vmul.f32 %v570_v48, %v554_v40  ;;  %v572_v54 = vmul.f32 %v570_v48, %v555_v19  ;;  %v373_v42 = vperm.slane %v368_v52, %v852_v37 }
 0x157   :  { %v573_v58 = vperm.slane %v571_v53, 0  ;;  %v574_v61 = vperm.slane %v572_v54, 0  ;;  %v381_v47 = vmul.f32 %v379_v57, %v373_v42 }
 0x159   :  { %v580_v45 = vmul.f32 %v576_v43, %v573_v58  ;;  %v581_v60 = vmul.f32 %v577_v56, %v574_v61  ;;  %v382_v1 = vadd.f32 %v381_v47, %v365_v63 }
 0x15b   :  { %v609_v5 = vperm.slane %v581_v60, 3  ;;  %v399_v4 = vadd.f32 %v398_v0, %v382_v1  ;;  %v583_v62 = vperm.slane %v581_v60, 0  ;;  %v591_v2 = vperm.slane %v581_v60, 1 }
 0x15c   :  { %v582_v3 = vperm.slane %v580_v45, 0  ;;  %v600_v14 = vperm.slane %v581_v60, 2  ;;  %v590_v9 = vperm.slane %v580_v45, 1  ;;  %v599_v20 = vperm.slane %v580_v45, 2 }
 0x15d   :  { %v408_v15 = vadd.f32 %v407_v8, %v399_v4  ;;  %v612_v16 = vrot.slane %v609_v5, 4  ;;  %v586_v21 = vrot.slane %v583_v62, 4  ;;  %v594_v11 = vrot.slane %v591_v2, 4 }
 0x15e   :  { %v603_v22 = vrot.slane %v600_v14, 4  ;;  %v608_v23 = vperm.slane %v580_v45, 3 }
 0x15f   :  { %409 = vst [vmem:[#allocation8] sm:$0xff] %v408_v15  ;;  %v587_v59 = vsel %vm86_vm0, %v582_v3, %v586_v21  ;;  %v595_v6 = vsel %vm86_vm0, %v590_v9, %v594_v11 }
 0x160   :  { %v589_v37 = vmul.f32 %v587_v59, %v340_v39  ;;  %v597_v25 = vmul.f32 %v595_v6, %v356_v38  ;;  %v604_v27 = vsel %vm86_vm0, %v599_v20, %v603_v22  ;;  %v613_v28 = vsel %vm86_vm0, %v608_v23, %v612_v16 }
 0x161   :  { %v606_v29 = vmul.f32 %v604_v27, %v373_v42  ;;  %v615_v12 = vmul.f32 %v613_v28, %v390_v50 }
 0x162   :  { %v598_v26 = vadd.f32 %v597_v25, %v589_v37 }
 0x164   :  { %v607_v33 = vadd.f32 %v606_v29, %v598_v26 }
 0x166   :  { %v616_v34 = vadd.f32 %v615_v12, %v607_v33 }
 0x168   :  { %v617_v35 = vadd.f32 %v616_v34, %v407_v8 }
 0x16a   :  { %619 = vst [vmem:[#allocation8 + $0x8] sm:$0xff] %v617_v35 }
 0x16b   :  { %632 = dma.vmem_to_hbm [thread:$0]  %s625_s27, 256, %s627_s30, [#allocation4], %s772_s20, %s772_s20, %s773_s21  }
 0x16c   :  { %769 = dma.done.wait [#allocation4], 256  }
 0x16d   :  { %770 = vsyncadd [#allocation4], 4294967040 }
 0x16e   :  { %637 = vsyncpa [#allocation3], 1 }
 0x16f   :  { %638 = vsyncpa [#allocation6], 1 }
 0x170   :  { %639 = vsyncpa [#allocation4], 1 }

</bundles_post_ra>
